<compile_context>
chip_gen: v7x
topology: tpu7x:2x2x1
jax: 0.10.0
libtpu: 0.0.40
codegen_flags: <defaults>
</compile_context>

<pallas_src>
import functools

import jax
import jax.numpy as jnp
import numpy as np
from jax.experimental import pallas as pl
from jax.experimental.pallas import tpu as pltpu


def _round_up(a: int, m: int) -> int:
    return (a + m - 1) // m * m


# ----------------------------------------------------------------------------
# Pallas kernel: one (tb, tn) output tile of y = x @ w^T, accumulated over K.
# ----------------------------------------------------------------------------
def _matmul_wt_kernel(x_ref, w_ref, o_ref, acc_ref):
    @pl.when(pl.program_id(2) == 0)
    def _init():
        acc_ref[...] = jnp.zeros_like(acc_ref)

    # x:(tb,tk) contracted with w:(tn,tk) over the last dim of both — the MXU
    # consumes this transposed-RHS contraction natively, no .T materialized.
    acc_ref[...] += jax.lax.dot_general(
        x_ref[...],
        w_ref[...],
        dimension_numbers=(((1,), (1,)), ((), ())),
        preferred_element_type=jnp.float32,
    )

    @pl.when(pl.program_id(2) == pl.num_programs(2) - 1)
    def _store():
        o_ref[...] = acc_ref[...].astype(o_ref.dtype)


@functools.partial(jax.jit, static_argnames=("out_dtype",))
def matmul_wt(x, w, out_dtype=jnp.float32):
    """Tiled, pipelined y = x @ w.T  (x:(B,K), w:(N,K) -> (B,N)).

    Operands are cast to bf16 (MXU-native on v5e/v6e/v7x), accumulation is f32.
    Inputs are zero-padded to tile multiples in the wrapper; result is sliced.
    """
    B, K = x.shape
    N, Kw = w.shape
    assert K == Kw, (x.shape, w.shape)

    xb = x.astype(jnp.bfloat16)
    wb = w.astype(jnp.bfloat16)

    # Tile sizes: aim for 256-wide output rows / 512-deep K (matches the
    # 256x256 MXU tile on v6e/v7x; multiples of 128 cover v5e), capped at the
    # padded full extent for small shapes. Batch second-minor padded to 16
    # sublanes for bf16 packing; output lane axis padded to >=128 so stores
    # are lane-dense (unmasked vst).
    tb = min(256, _round_up(B, 16))
    tn = min(256, _round_up(N, 128))
    tk = min(512, _round_up(K, 128))

    Bp, Np, Kp = _round_up(B, tb), _round_up(N, tn), _round_up(K, tk)
    xp = jnp.pad(xb, ((0, Bp - B), (0, Kp - K)))
    wp = jnp.pad(wb, ((0, Np - N), (0, Kp - K)))

    grid = (Bp // tb, Np // tn, Kp // tk)

    cost = pl.CostEstimate(
        flops=2 * Bp * Np * Kp,
        transcendentals=0,
        bytes_accessed=xp.size * 2 + wp.size * 2 + Bp * Np * 4,
    )

    out = pl.pallas_call(
        _matmul_wt_kernel,
        out_shape=jax.ShapeDtypeStruct((Bp, Np), out_dtype),
        grid_spec=pltpu.PrefetchScalarGridSpec(
            num_scalar_prefetch=0,
            grid=grid,
            in_specs=[
                pl.BlockSpec((tb, tk), lambda i, j, k: (i, k)),
                pl.BlockSpec((tn, tk), lambda i, j, k: (j, k)),
            ],
            out_specs=pl.BlockSpec((tb, tn), lambda i, j, k: (i, j)),
            scratch_shapes=[pltpu.VMEM((tb, tn), jnp.float32)],
        ),
        compiler_params=pltpu.CompilerParams(
            dimension_semantics=("parallel", "parallel", "arbitrary"),
            # Per-step working set is < 2 MiB even at max tiles; this limit is
            # comfortable headroom on v5e (16 MiB default) through v7x (64 MiB
            # physical per TC).
            vmem_limit_bytes=48 * 1024 * 1024,
        ),
        cost_estimate=cost,
    )(xp, wp)
    return out[:B, :N]


# ----------------------------------------------------------------------------
# SubspaceLR (JAX port; parameter bookkeeping is glue, forward is Pallas)
# ----------------------------------------------------------------------------
def _decompose(parameter: jnp.ndarray):
    """SVD -> (U, V) with sqrt(s) folded into both (mirrors torch _decompose)."""
    u, s, vh = jnp.linalg.svd(parameter, full_matrices=False)
    s_sqrt = jnp.diag(jnp.sqrt(s))
    return u @ s_sqrt, s_sqrt @ vh


class SubspaceLR:
    def __init__(self, num_rows: int, num_cols: int, key):
        self.num_rows = num_rows
        self.num_cols = num_cols
        # torch.empty is uninitialized; use a deterministic init instead.
        w = jax.random.normal(key, (num_rows, num_cols), dtype=jnp.float32) * 0.1
        self.weights = [w]  # leaf, W mode
        self.sv_mask = None
        self._uc = None  # rank-compacted U          (num_rows, r_nz)
        self._vc = None  # rank-compacted, mask-folded V  (r_nz, num_cols)

    def max_rank(self) -> int:
        return min(self.num_rows, self.num_cols)

    def set_mask(self, new_mask: jnp.ndarray):
        assert new_mask.shape == (self.max_rank(),)
        self.sv_mask = jnp.asarray(new_mask, jnp.float32)
        if len(self.weights) == 1:
            u, v = _decompose(self.weights[0])
            self.weights = [u, v]
        # Fold the (constant) mask into V once and compact to the nonzero
        # singular directions: removes a per-tile VPU multiply + one DMA
        # stream, and cuts MXU work / HBM traffic by the masked fraction.
        mask_np = np.asarray(self.sv_mask)
        nz_np = np.nonzero(mask_np)[0]
        if nz_np.size == 0:
            self._uc, self._vc = None, None
            return
        nz = jnp.asarray(nz_np, jnp.int32)
        u, v = self.weights
        self._uc = jnp.take(u, nz, axis=1)
        self._vc = jnp.take(v, nz, axis=0) * jnp.take(self.sv_mask, nz)[:, None]

    def eff_weights_ref(self) -> jnp.ndarray:
        """Plain-JAX reference of eff_weights(), used for verification only."""
        if len(self.weights) == 1:
            return self.weights[0]
        u, v = self.weights
        return u @ jnp.diag(self.sv_mask) @ v

    def forward(self, x: jnp.ndarray) -> jnp.ndarray:
        """F.linear(x, eff_weights()) implemented with the tiled Pallas kernel."""
        if len(self.weights) == 1:
            return matmul_wt(x, self.weights[0])
        if self._uc is None:  # every singular value masked out
            return jnp.zeros((x.shape[0], self.num_rows), x.dtype)
        # y = x @ (U diag(m) V)^T = (x @ Vm^T) @ Uc^T  (rank-compacted)
        z = matmul_wt(x, self._vc)     # (B, r_nz)
        return matmul_wt(z, self._uc)  # (B, num_rows)


# ----------------------------------------------------------------------------
# bf16-consistent plain-JAX references (same cast path as the kernel)
# ----------------------------------------------------------------------------
def _bf16_ref_matmul_wt(x, w):
    xb = x.astype(jnp.bfloat16).astype(jnp.float32)
    wb = w.astype(jnp.bfloat16).astype(jnp.float32)
    return xb @ wb.T


# ----------------------------------------------------------------------------
# Main
# ----------------------------------------------------------------------------
if __name__ == "__main__":
    key = jax.random.PRNGKey(0)
    k_w, k_x, k_w2, k_x2 = jax.random.split(key, 4)

    # --- W mode forward (tiny shapes, single-tile grid) ---
    batch, num_cols, num_rows = 8, 32, 16  # in_features=32, out_features=16
    layer = SubspaceLR(num_rows=num_rows, num_cols=num_cols, key=k_w)
    x = jax.random.normal(k_x, (batch, num_cols), dtype=jnp.float32)

    y_w = jax.block_until_ready(layer.forward(x))
    # Tight check vs bf16-consistent reference (same cast path as the kernel).
    y_w_bref = _bf16_ref_matmul_wt(x, layer.weights[0])
    np.testing.assert_allclose(np.asarray(y_w), np.asarray(y_w_bref),
                               rtol=1e-3, atol=1e-3)
    # Loose semantic check vs full-precision eff_weights (bf16 tolerance).
    y_w_ref = x @ layer.eff_weights_ref().T
    np.testing.assert_allclose(np.asarray(y_w), np.asarray(y_w_ref),
                               rtol=5e-2, atol=5e-2)

    # --- UV mode forward (mask half of the singular vectors) ---
    half = layer.max_rank() // 2
    mask = jnp.concatenate(
        [jnp.ones(half), jnp.zeros(layer.max_rank() - half)]
    ).astype(jnp.float32)
    layer.set_mask(mask)

    y_uv = jax.block_until_ready(layer.forward(x))
    z_bref = _bf16_ref_matmul_wt(x, layer._vc)
    y_uv_bref = _bf16_ref_matmul_wt(z_bref, layer._uc)
    np.testing.assert_allclose(np.asarray(y_uv), np.asarray(y_uv_bref),
                               rtol=1e-3, atol=1e-3)
    y_uv_ref = x @ layer.eff_weights_ref().T
    np.testing.assert_allclose(np.asarray(y_uv), np.asarray(y_uv_ref),
                               rtol=5e-2, atol=5e-2)

    # --- Multi-tile grid check (exercises j and k tiling + K accumulator) ---
    B2, C2, R2 = 32, 640, 384   # pads to grid (1, 2, 2) with tn=256, tk=512
    layer2 = SubspaceLR(num_rows=R2, num_cols=C2, key=k_w2)
    x2 = jax.random.normal(k_x2, (B2, C2), dtype=jnp.float32)
    y2 = jax.block_until_ready(layer2.forward(x2))
    y2_bref = _bf16_ref_matmul_wt(x2, layer2.weights[0])
    np.testing.assert_allclose(np.asarray(y2), np.asarray(y2_bref),
                               rtol=1e-3, atol=1e-3)

    print("KERNEL_OK")
</pallas_src>

<mosaic_0001>
module attributes {stable_mosaic.version = 11 : i64} {
  func.func @_matmul_wt_kernel(%arg0: i32, %arg1: i32, %arg2: i32, %arg3: memref<16x128xbf16, #tpu.memory_space<vmem>>, %arg4: memref<128x128xbf16, #tpu.memory_space<vmem>>, %arg5: memref<16x128xf32, #tpu.memory_space<vmem>>, %arg6: memref<16x128xf32, #tpu.memory_space<vmem>>) attributes {dimension_semantics = [#tpu.dimension_semantics<parallel>, #tpu.dimension_semantics<parallel>, #tpu.dimension_semantics<arbitrary>], iteration_bounds = array<i64: 1, 1, 1>, scalar_prefetch = 0 : i64, scratch_operands = 1 : i64, tpu.core_type = #tpu.core_type<tc>, window_params = [{transform_indices = @transform_0, window_bounds = array<i64: 16, 128>}, {transform_indices = @transform_1, window_bounds = array<i64: 128, 128>}, {transform_indices = @transform_2, window_bounds = array<i64: 16, 128>}]} {
    %c0_i32 = arith.constant 0 : i32
    %0 = arith.cmpi eq, %arg2, %c0_i32 : i32
    %1 = arith.extui %0 : i1 to i32
    %c0_i32_0 = arith.constant 0 : i32
    %2 = arith.cmpi ne, %1, %c0_i32_0 : i32
    scf.if %2 {
      %cst_10 = arith.constant 0.000000e+00 : f32
      %12 = vector.broadcast %cst_10 : f32 to vector<16x128xf32>
      %c0_11 = arith.constant 0 : index
      %c0_12 = arith.constant 0 : index
      %13 = vector.load %arg6[%c0_11, %c0_12] : memref<16x128xf32, #tpu.memory_space<vmem>>, vector<16x128xf32>
      tpu.vector_store %arg6[%c0_11, %c0_12], %12 {strides = array<i32>} : memref<16x128xf32, #tpu.memory_space<vmem>>, vector<16x128xf32>,
    } else {
    }
    %c0 = arith.constant 0 : index
    %c0_1 = arith.constant 0 : index
    %3 = vector.load %arg6[%c0, %c0_1] : memref<16x128xf32, #tpu.memory_space<vmem>>, vector<16x128xf32>
    %c0_2 = arith.constant 0 : index
    %c0_3 = arith.constant 0 : index
    %4 = vector.load %arg3[%c0_2, %c0_3] : memref<16x128xbf16, #tpu.memory_space<vmem>>, vector<16x128xbf16>
    %c0_4 = arith.constant 0 : index
    %c0_5 = arith.constant 0 : index
    %5 = vector.load %arg4[%c0_4, %c0_5] : memref<128x128xbf16, #tpu.memory_space<vmem>>, vector<128x128xbf16>
    %cst = arith.constant dense<0.000000e+00> : vector<16x128xf32>
    %6 = tpu.matmul %4, %5, %cst {dimension_numbers = #tpu.dot_dimension_numbers<[1], [1], [0], [0], [0, 0, 1, 0], [], []>} : vector<16x128xbf16>, vector<128x128xbf16>, vector<16x128xf32> -> vector<16x128xf32>
    %7 = arith.addf %3, %6 : vector<16x128xf32>
    %c0_6 = arith.constant 0 : index
    %c0_7 = arith.constant 0 : index
    %8 = vector.load %arg6[%c0_6, %c0_7] : memref<16x128xf32, #tpu.memory_space<vmem>>, vector<16x128xf32>
    tpu.vector_store %arg6[%c0_6, %c0_7], %7 {strides = array<i32>} : memref<16x128xf32, #tpu.memory_space<vmem>>, vector<16x128xf32>,
    %c0_i32_8 = arith.constant 0 : i32
    %9 = arith.cmpi eq, %arg2, %c0_i32_8 : i32
    %10 = arith.extui %9 : i1 to i32
    %c0_i32_9 = arith.constant 0 : i32
    %11 = arith.cmpi ne, %10, %c0_i32_9 : i32
    scf.if %11 {
      %c0_10 = arith.constant 0 : index
      %c0_11 = arith.constant 0 : index
      %12 = vector.load %arg6[%c0_10, %c0_11] : memref<16x128xf32, #tpu.memory_space<vmem>>, vector<16x128xf32>
      %c0_12 = arith.constant 0 : index
      %c0_13 = arith.constant 0 : index
      %13 = vector.load %arg5[%c0_12, %c0_13] : memref<16x128xf32, #tpu.memory_space<vmem>>, vector<16x128xf32>
      tpu.vector_store %arg5[%c0_12, %c0_13], %12 {strides = array<i32>} : memref<16x128xf32, #tpu.memory_space<vmem>>, vector<16x128xf32>,
    } else {
    }
    return
  }
  func.func @transform_0(%arg0: i32, %arg1: i32, %arg2: i32) -> (i32, i32) {
    %c0_i32 = arith.constant 0 : i32
    return %arg0, %arg2 : i32, i32
  }
  func.func @transform_1(%arg0: i32, %arg1: i32, %arg2: i32) -> (i32, i32) {
    %c0_i32 = arith.constant 0 : i32
    return %arg1, %arg2 : i32, i32
  }
  func.func @transform_2(%arg0: i32, %arg1: i32, %arg2: i32) -> (i32, i32) {
    %c0_i32 = arith.constant 0 : i32
    return %arg0, %arg1 : i32, i32
  }
}

</mosaic_0001>

<bundles_post_ra>
// kernel: matmul_wt.1
= control target key start
LH: loop header
LB: loop body
LE: loop exit
PB: predicated region body
PF: predicated region fallthrough
CT: control target
= control target key end

     0   :  { %v197_v0 = vmov 0.0   ;;  %vm198_vm0 = vmmov 0   ;;  %s247_s1 = inlined_call_operand.vmem [shape: bf16[128,128], index: 1, kind: input, shape index: {}]   ;;  %s248_s0 = inlined_call_operand.vmem [shape: bf16[16,128], index: 0, kind: input, shape index: {}]   ;;  %s249_s2 = inlined_call_operand.vmem [shape: f32[16,128], index: 2, kind: output, shape index: {}]  }
   0x1   :  { %166 = vmatprep.subr.bf16.mxu0 %v197_v0  ;;  %v188_v1 = vld [vmem:[%s247_s1] sm:$0xff]   ;;  %182 = vmatprep.mubr.msk.bf16.mxu0 %vm198_vm0, %v197_v0  ;;  %v189_v2 = vld [vmem:[%s247_s1 + $0x8] sm:$0xff]   ;;  %v190_v3 = vld [vmem:[%s247_s1 + $0x10] sm:$0xff]  }
   0x2   :  { %167 = vmatpush3.bf16.xpose.msra.mxu0 %v188_v1  ;;  %v191_v4 = vld [vmem:[%s247_s1 + $0x18] sm:$0xff]   ;;  %v192_v5 = vld [vmem:[%s247_s1 + $0x20] sm:$0xff]   ;;  %v193_v6 = vld [vmem:[%s247_s1 + $0x28] sm:$0xff]  }
   0x3   :  { %168 = vmatprep.subr.bf16.mxu0 %v197_v0  ;;  %v194_v7 = vld [vmem:[%s247_s1 + $0x30] sm:$0xff]   ;;  %v195_v8 = vld [vmem:[%s247_s1 + $0x38] sm:$0xff]   ;;  %v196_v9 = vld [vmem:[%s248_s0] sm:$0xff]  }
   0xa   :  { %169 = vmatpush3.bf16.xpose.msra.mxu0 %v189_v2 }
   0xb   :  { %170 = vmatprep.subr.bf16.mxu0 %v197_v0 }
  0x12   :  { %171 = vmatpush3.bf16.xpose.msra.mxu0 %v190_v3 }
  0x13   :  { %172 = vmatprep.subr.bf16.mxu0 %v197_v0 }
  0x1a   :  { %173 = vmatpush3.bf16.xpose.msra.mxu0 %v191_v4 }
  0x1b   :  { %174 = vmatprep.subr.bf16.mxu0 %v197_v0 }
  0x22   :  { %175 = vmatpush3.bf16.xpose.msra.mxu0 %v192_v5 }
  0x23   :  { %176 = vmatprep.subr.bf16.mxu0 %v197_v0 }
  0x2a   :  { %177 = vmatpush3.bf16.xpose.msra.mxu0 %v193_v6 }
  0x2b   :  { %178 = vmatprep.subr.bf16.mxu0 %v197_v0 }
  0x32   :  { %179 = vmatpush3.bf16.xpose.msra.mxu0 %v194_v7 }
  0x33   :  { %180 = vmatprep.subr.bf16.mxu0 %v197_v0 }
  0x3a   :  { %181 = vmatpush3.bf16.xpose.msra.mxu0 %v195_v8 }
  0x41   :  { %183 = vmatmul.mubr.bf16.vlgmr.msra.gmra.mrb[0].mxu0 %v196_v9 }
 0x114   :  { %v126_v10 = vpop.f32.mrb[0].mxu0 }
 0x115   :  { %142 = vst [vmem:[%s249_s2] sm:$0xff] %v126_v10  ;;  %v184_v11 = vpop.f32.mrb[1].mxu0 }
 0x116   :  { %v129_v12 = vpop.f32.mrb[2].mxu0 }
 0x117   :  { %143 = vst [vmem:[%s249_s2 + $0x8] sm:$0xff] %v129_v12  ;;  %v185_v13 = vpop.f32.mrb[3].mxu0 }

</bundles_post_ra>
